<compile_context>
chip_gen: v7x
topology: tpu7x:2x2x1
jax: 0.10.0
libtpu: 0.0.40
codegen_flags: <defaults>
</compile_context>

<pallas_src>
import math
import functools

import jax
import jax.numpy as jnp
from jax.experimental import pallas as pl
from jax.experimental.pallas import tpu as pltpu


def _round_up(x: int, m: int) -> int:
    return (x + m - 1) // m * m


def _cdiv(a: int, b: int) -> int:
    return (a + b - 1) // b


# ----------------------------------------------------------------------------
# Kernel: all layers in one body; intermediates never leave VMEM/vregs.
# ----------------------------------------------------------------------------
def _fused_mlp_kernel(*refs, acts):
    # refs = (x_ref, w0, b0, w1, b1, ..., o_ref)
    x_ref, o_ref = refs[0], refs[-1]
    wb = refs[1:-1]
    n_layers = len(acts)

    h = x_ref[...]                                    # (tm, Kpad0) bf16
    for l, act in enumerate(acts):                    # static, small L
        w_ref, b_ref = wb[2 * l], wb[2 * l + 1]
        y = jnp.dot(h, w_ref[...], preferred_element_type=jnp.float32)
        y = y + b_ref[...]                            # (1, Npad_l) broadcast
        if act:
            # SiLU / swish; sigmoid's exp lands on the EUP slot.
            y = y * jax.nn.sigmoid(y)
        # Carry bf16 between layers (same bits the MXU sees) -> half the
        # vreg/VMEM pressure; last layer stays f32 for the stored output.
        h = y.astype(jnp.bfloat16) if l + 1 < n_layers else y
    o_ref[...] = h.astype(o_ref.dtype)


# ----------------------------------------------------------------------------
# One-time parameter packing (hoisted out of the per-call path).
# ----------------------------------------------------------------------------
def pack_mlp_params(params):
    """params: list of (W:(C_in,C_out) f32, b:(C_out,) f32). Pads each layer to
    its own (Kpad, Npad) multiple of 128; weights bf16, biases f32."""
    dims = [params[0][0].shape[0]] + [w.shape[1] for (w, _) in params]
    packed_w, packed_b, shapes = [], [], []
    for (w, b), k, n in zip(params, dims[:-1], dims[1:]):
        assert w.shape == (k, n) and b.shape == (n,)
        kp, npd = _round_up(k, 128), _round_up(n, 128)
        wp = jnp.pad(w.astype(jnp.bfloat16), ((0, kp - k), (0, npd - n)))
        bp = jnp.pad(b.astype(jnp.float32), (0, npd - n)).reshape(1, npd)
        packed_w.append(wp)
        packed_b.append(bp)
        shapes.append((kp, npd))
    # Zero padding is exact: padded weight rows/cols and biases are zero, and
    # SiLU(0) = 0, so padded feature columns stay zero through every layer.
    return {"w": tuple(packed_w), "b": tuple(packed_b),
            "dims": tuple(dims), "shapes": tuple(shapes)}


# ----------------------------------------------------------------------------
# Fused forward pass.
# ----------------------------------------------------------------------------
def fused_mlp_apply(x, packed, final_activation=False, *, block_m: int = 512):
    dims, shapes = packed["dims"], packed["shapes"]
    L = len(shapes)
    c_in, c_out = dims[0], dims[-1]
    assert x.shape[-1] == c_in
    lead = x.shape[:-1]

    x2 = x.reshape(-1, c_in)
    M = x2.shape[0]
    kpad0 = shapes[0][0]
    npad_out = shapes[-1][1]
    out_dtype = x.dtype

    # Channel-pad + bf16 cast the input once (halves input HBM bytes; the
    # kernel feeds the MXU bf16 anyway).  No M padding pass.
    x_bf = x2.astype(jnp.bfloat16)
    if kpad0 != c_in:
        x_bf = jnp.pad(x_bf, ((0, 0), (0, kpad0 - c_in)))

    # M tiling: ragged last tile is clipped by Pallas (garbage rows never
    # written).  Force >=2 grid steps when there's enough work so the
    # "parallel" axis can use v7x's second TensorCore.
    n_tiles = max(_cdiv(M, block_m), 2 if M >= 64 else 1)
    tm = _round_up(_cdiv(M, n_tiles), 8)
    grid_m = _cdiv(M, tm)

    acts = tuple((l < L - 1) or final_activation for l in range(L))
    kernel = functools.partial(_fused_mlp_kernel, acts=acts)

    flat_wb = []
    for wp, bp in zip(packed["w"], packed["b"]):
        flat_wb += [wp, bp]

    # Scoped-VMEM budget: weight/bias slabs (+double-buffer worst case) +
    # double-buffered x/out tiles + f32 intermediates, with headroom.
    w_bytes = sum(kp * npd * 2 + npd * 4 for kp, npd in shapes)
    io_bytes = 2 * tm * kpad0 * 2 + 2 * tm * npad_out * 4
    act_bytes = 2 * tm * max(npd for _, npd in shapes) * 4
    need = 2 * w_bytes + io_bytes + act_bytes + (8 << 20)
    vmem_limit = int(min(max(need, 32 << 20), 100 << 20))
    # TODO(synk): for very wide layers (weight stack approaching v7x's 64 MiB
    # VMEM) stream one layer's weight at a time from HBM (pl.ANY +
    # make_async_copy double-buffer) and tile N in 256-wide chunks for the
    # v6e/v7x 256x256 MXU instead of keeping the whole stack resident.

    def run(single_buffer_weights):
        wb_kwargs = (
            {"pipeline_mode": pl.Buffered(1)} if single_buffer_weights else {})
        in_specs = [pl.BlockSpec((tm, kpad0), lambda i: (i, 0))]       # x rows
        for kp, npd in shapes:
            # Grid-invariant weight / bias blocks: single-buffered.
            in_specs.append(pl.BlockSpec((kp, npd), lambda i: (0, 0), **wb_kwargs))
            in_specs.append(pl.BlockSpec((1, npd), lambda i: (0, 0), **wb_kwargs))
        return pl.pallas_call(
            kernel,
            out_shape=jax.ShapeDtypeStruct((M, npad_out), out_dtype),
            grid=(grid_m,),
            in_specs=in_specs,
            out_specs=pl.BlockSpec((tm, npad_out), lambda i: (i, 0)),
            compiler_params=pltpu.CompilerParams(
                dimension_semantics=("parallel",),   # shards M tiles across TCs
                vmem_limit_bytes=vmem_limit,
            ),
        )(x_bf, *flat_wb)

    try:
        out = run(True)
    except Exception:   # fallback for JAX builds without per-operand Buffered
        out = run(False)

    if npad_out != c_out:
        out = out[:, :c_out]
    return out.reshape(*lead, c_out)


class FusedMLP:
    """Packs (pads + casts) the parameters once; reuses them every forward."""

    def __init__(self, params, final_activation=False):
        self.packed = pack_mlp_params(params)
        self.final_activation = final_activation
        self.out_channel = self.packed["dims"][-1]

    def __call__(self, x, *, block_m: int = 512):
        # TODO(synk): dropout > 0.0 (training-mode nn.Dropout) not implemented
        # (module default dropout=0.0 adds no dropout layer).
        return fused_mlp_apply(x, self.packed, self.final_activation,
                               block_m=block_m)


def mlp_forward(x, params, final_activation=False):
    """Convenience one-shot path (packs every call; prefer FusedMLP)."""
    return FusedMLP(params, final_activation)(x)


# ----------------------------------------------------------------------------
# Parameter init (PyTorch nn.Linear default: U(-1/sqrt(fan_in), 1/sqrt(fan_in)))
# ----------------------------------------------------------------------------
def init_mlp_params(key, in_channel, out_channels):
    params = []
    c_in = in_channel
    for c_out in out_channels:
        key, kw, kb = jax.random.split(key, 3)
        bound = 1.0 / math.sqrt(c_in)
        w = jax.random.uniform(kw, (c_in, c_out), jnp.float32, -bound, bound)
        b = jax.random.uniform(kb, (c_out,), jnp.float32, -bound, bound)
        params.append((w, b))
        c_in = c_out
    return params


# ----------------------------------------------------------------------------
# Pure-JAX references.
# ----------------------------------------------------------------------------
def mlp_reference_bf16(x, params, final_activation=False):
    """Matches the kernel's numerics: bf16 MXU inputs & bf16 layer carry,
    f32 accumulate / bias / SiLU."""
    n = len(params)
    lead = x.shape[:-1]
    h = x.reshape(-1, x.shape[-1]).astype(jnp.bfloat16)
    for idx, (w, b) in enumerate(params):
        y = jnp.dot(h, w.astype(jnp.bfloat16),
                    preferred_element_type=jnp.float32) + b.astype(jnp.float32)
        if (idx < n - 1) or final_activation:
            y = y * jax.nn.sigmoid(y)
        h = y.astype(jnp.bfloat16) if idx + 1 < n else y
    return h.astype(x.dtype).reshape(*lead, params[-1][0].shape[1])


def mlp_reference_f32(x, params, final_activation=False):
    n = len(params)
    lead = x.shape[:-1]
    h = x.reshape(-1, x.shape[-1]).astype(jnp.float32)
    for idx, (w, b) in enumerate(params):
        h = h @ w + b
        if (idx < n - 1) or final_activation:
            h = h * jax.nn.sigmoid(h)
    return h.reshape(*lead, params[-1][0].shape[1])


if __name__ == "__main__":
    key = jax.random.PRNGKey(0)
    k_in, k_in2, k_par = jax.random.split(key, 3)

    in_channel = 32
    out_channels = [64, 16]        # MLP(in_channel=32, out_channels=[64, 16])
    params = init_mlp_params(k_par, in_channel, out_channels)
    mlp = FusedMLP(params, final_activation=False)   # weights packed once here

    # 2-D input.
    x = jax.random.normal(k_in, (8, in_channel), jnp.float32)
    y = jax.block_until_ready(mlp(x))
    assert y.shape == (8, out_channels[-1])
    y_bf16 = mlp_reference_bf16(x, params)
    assert jnp.allclose(y, y_bf16, atol=1e-2, rtol=1e-2), "mismatch vs bf16 ref"
    y_f32 = mlp_reference_f32(x, params)
    assert jnp.allclose(y, y_f32, atol=5e-2, rtol=5e-2), "mismatch vs f32 ref"

    # 3-D input with a ragged flattened batch (exercises leading-dim flatten
    # and the clipped last M tile).
    x2 = jax.random.normal(k_in2, (2, 5, in_channel), jnp.float32)
    y2 = jax.block_until_ready(mlp(x2))
    assert y2.shape == (2, 5, out_channels[-1])
    y2_bf16 = mlp_reference_bf16(x2, params)
    assert jnp.allclose(y2, y2_bf16, atol=1e-2, rtol=1e-2), "3-D mismatch"

    print("KERNEL_OK")
</pallas_src>

<mosaic_0001>
module attributes {stable_mosaic.version = 11 : i64} {
  func.func @_fused_mlp_kernel(%arg0: i32, %arg1: memref<8x128xbf16, #tpu.memory_space<vmem>>, %arg2: memref<128x128xbf16, #tpu.memory_space<vmem>>, %arg3: memref<1x128xf32, #tpu.memory_space<vmem>>, %arg4: memref<128x128xbf16, #tpu.memory_space<vmem>>, %arg5: memref<1x128xf32, #tpu.memory_space<vmem>>, %arg6: memref<8x128xf32, #tpu.memory_space<vmem>>) attributes {dimension_semantics = [#tpu.dimension_semantics<parallel>], iteration_bounds = array<i64: 1>, scalar_prefetch = 0 : i64, scratch_operands = 0 : i64, tpu.core_type = #tpu.core_type<tc>, window_params = [{transform_indices = @transform_0, window_bounds = array<i64: 8, 128>}, {pipeline_mode = #tpu.pipeline_mode<synchronous>, transform_indices = @transform_1, window_bounds = array<i64: 128, 128>}, {pipeline_mode = #tpu.pipeline_mode<synchronous>, transform_indices = @transform_2, window_bounds = array<i64: 1, 128>}, {pipeline_mode = #tpu.pipeline_mode<synchronous>, transform_indices = @transform_3, window_bounds = array<i64: 128, 128>}, {pipeline_mode = #tpu.pipeline_mode<synchronous>, transform_indices = @transform_4, window_bounds = array<i64: 1, 128>}, {transform_indices = @transform_5, window_bounds = array<i64: 8, 128>}]} {
    %c0 = arith.constant 0 : index
    %c0_0 = arith.constant 0 : index
    %0 = vector.load %arg1[%c0, %c0_0] : memref<8x128xbf16, #tpu.memory_space<vmem>>, vector<8x128xbf16>
    %c0_1 = arith.constant 0 : index
    %c0_2 = arith.constant 0 : index
    %1 = vector.load %arg2[%c0_1, %c0_2] : memref<128x128xbf16, #tpu.memory_space<vmem>>, vector<128x128xbf16>
    %cst = arith.constant dense<0.000000e+00> : vector<8x128xf32>
    %2 = tpu.matmul %0, %1, %cst {dimension_numbers = #tpu.dot_dimension_numbers<[1], [0], [0], [1], [0, 0, 1, 1], [], []>} : vector<8x128xbf16>, vector<128x128xbf16>, vector<8x128xf32> -> vector<8x128xf32>
    %c0_3 = arith.constant 0 : index
    %c0_4 = arith.constant 0 : index
    %3 = vector.load %arg3[%c0_3, %c0_4] : memref<1x128xf32, #tpu.memory_space<vmem>>, vector<1x128xf32>
    %4 = vector.broadcast %3 : vector<1x128xf32> to vector<8x128xf32>
    %5 = arith.addf %2, %4 : vector<8x128xf32>
    %6 = arith.negf %5 : vector<8x128xf32>
    %7 = math.exp %6 : vector<8x128xf32>
    %cst_5 = arith.constant 1.000000e+00 : f32
    %8 = vector.broadcast %cst_5 : f32 to vector<8x128xf32>
    %9 = arith.addf %8, %7 : vector<8x128xf32>
    %10 = arith.divf %8, %9 : vector<8x128xf32>
    %11 = arith.mulf %5, %10 : vector<8x128xf32>
    %12 = arith.truncf %11 : vector<8x128xf32> to vector<8x128xbf16>
    %c0_6 = arith.constant 0 : index
    %c0_7 = arith.constant 0 : index
    %13 = vector.load %arg4[%c0_6, %c0_7] : memref<128x128xbf16, #tpu.memory_space<vmem>>, vector<128x128xbf16>
    %cst_8 = arith.constant dense<0.000000e+00> : vector<8x128xf32>
    %14 = tpu.matmul %12, %13, %cst_8 {dimension_numbers = #tpu.dot_dimension_numbers<[1], [0], [0], [1], [0, 0, 1, 1], [], []>} : vector<8x128xbf16>, vector<128x128xbf16>, vector<8x128xf32> -> vector<8x128xf32>
    %c0_9 = arith.constant 0 : index
    %c0_10 = arith.constant 0 : index
    %15 = vector.load %arg5[%c0_9, %c0_10] : memref<1x128xf32, #tpu.memory_space<vmem>>, vector<1x128xf32>
    %16 = vector.broadcast %15 : vector<1x128xf32> to vector<8x128xf32>
    %17 = arith.addf %14, %16 : vector<8x128xf32>
    %c0_11 = arith.constant 0 : index
    %c0_12 = arith.constant 0 : index
    %18 = vector.load %arg6[%c0_11, %c0_12] : memref<8x128xf32, #tpu.memory_space<vmem>>, vector<8x128xf32>
    tpu.vector_store %arg6[%c0_11, %c0_12], %17 {strides = array<i32>} : memref<8x128xf32, #tpu.memory_space<vmem>>, vector<8x128xf32>,
    return
  }
  func.func @transform_0(%arg0: i32) -> (i32, i32) {
    %c0_i32 = arith.constant 0 : i32
    %c0_i32_0 = arith.constant 0 : i32
    return %arg0, %c0_i32 : i32, i32
  }
  func.func @transform_1(%arg0: i32) -> (i32, i32) {
    %c0_i32 = arith.constant 0 : i32
    %c0_i32_0 = arith.constant 0 : i32
    %c0_i32_1 = arith.constant 0 : i32
    return %c0_i32, %c0_i32_0 : i32, i32
  }
  func.func @transform_2(%arg0: i32) -> (i32, i32) {
    %c0_i32 = arith.constant 0 : i32
    %c0_i32_0 = arith.constant 0 : i32
    %c0_i32_1 = arith.constant 0 : i32
    return %c0_i32, %c0_i32_0 : i32, i32
  }
  func.func @transform_3(%arg0: i32) -> (i32, i32) {
    %c0_i32 = arith.constant 0 : i32
    %c0_i32_0 = arith.constant 0 : i32
    %c0_i32_1 = arith.constant 0 : i32
    return %c0_i32, %c0_i32_0 : i32, i32
  }
  func.func @transform_4(%arg0: i32) -> (i32, i32) {
    %c0_i32 = arith.constant 0 : i32
    %c0_i32_0 = arith.constant 0 : i32
    %c0_i32_1 = arith.constant 0 : i32
    return %c0_i32, %c0_i32_0 : i32, i32
  }
  func.func @transform_5(%arg0: i32) -> (i32, i32) {
    %c0_i32 = arith.constant 0 : i32
    %c0_i32_0 = arith.constant 0 : i32
    return %arg0, %c0_i32 : i32, i32
  }
}

module attributes {stable_mosaic.version = 11 : i64} {
  func.func @_fused_mlp_kernel(%arg0: i32, %arg1: memref<8x128xbf16, #tpu.memory_space<vmem>>, %arg2: memref<128x128xbf16, #tpu.memory_space<vmem>>, %arg3: memref<1x128xf32, #tpu.memory_space<vmem>>, %arg4: memref<128x128xbf16, #tpu.memory_space<vmem>>, %arg5: memref<1x128xf32, #tpu.memory_space<vmem>>, %arg6: memref<8x128xf32, #tpu.memory_space<vmem>>) attributes {dimension_semantics = [#tpu.dimension_semantics<parallel>], iteration_bounds = array<i64: 1>, scalar_prefetch = 0 : i64, scratch_operands = 0 : i64, tpu.core_type = #tpu.core_type<tc>, window_params = [{transform_indices = @transform_0, window_bounds = array<i64: 8, 128>}, {pipeline_mode = #tpu.pipeline_mode<synchronous>, transform_indices = @transform_1, window_bounds = array<i64: 128, 128>}, {pipeline_mode = #tpu.pipeline_mode<synchronous>, transform_indices = @transform_2, window_bounds = array<i64: 1, 128>}, {pipeline_mode = #tpu.pipeline_mode<synchronous>, transform_indices = @transform_3, window_bounds = array<i64: 128, 128>}, {pipeline_mode = #tpu.pipeline_mode<synchronous>, transform_indices = @transform_4, window_bounds = array<i64: 1, 128>}, {transform_indices = @transform_5, window_bounds = array<i64: 8, 128>}]} {
    %c0 = arith.constant 0 : index
    %c0_0 = arith.constant 0 : index
    %0 = vector.load %arg1[%c0, %c0_0] : memref<8x128xbf16, #tpu.memory_space<vmem>>, vector<8x128xbf16>
    %c0_1 = arith.constant 0 : index
    %c0_2 = arith.constant 0 : index
    %1 = vector.load %arg2[%c0_1, %c0_2] : memref<128x128xbf16, #tpu.memory_space<vmem>>, vector<128x128xbf16>
    %cst = arith.constant dense<0.000000e+00> : vector<8x128xf32>
    %2 = tpu.matmul %0, %1, %cst {dimension_numbers = #tpu.dot_dimension_numbers<[1], [0], [0], [1], [0, 0, 1, 1], [], []>} : vector<8x128xbf16>, vector<128x128xbf16>, vector<8x128xf32> -> vector<8x128xf32>
    %c0_3 = arith.constant 0 : index
    %c0_4 = arith.constant 0 : index
    %3 = vector.load %arg3[%c0_3, %c0_4] : memref<1x128xf32, #tpu.memory_space<vmem>>, vector<1x128xf32>
    %4 = vector.broadcast %3 : vector<1x128xf32> to vector<8x128xf32>
    %5 = arith.addf %2, %4 : vector<8x128xf32>
    %6 = arith.negf %5 : vector<8x128xf32>
    %7 = math.exp %6 : vector<8x128xf32>
    %cst_5 = arith.constant 1.000000e+00 : f32
    %8 = vector.broadcast %cst_5 : f32 to vector<8x128xf32>
    %9 = arith.addf %8, %7 : vector<8x128xf32>
    %10 = arith.divf %8, %9 : vector<8x128xf32>
    %11 = arith.mulf %5, %10 : vector<8x128xf32>
    %12 = arith.truncf %11 : vector<8x128xf32> to vector<8x128xbf16>
    %c0_6 = arith.constant 0 : index
    %c0_7 = arith.constant 0 : index
    %13 = vector.load %arg4[%c0_6, %c0_7] : memref<128x128xbf16, #tpu.memory_space<vmem>>, vector<128x128xbf16>
    %cst_8 = arith.constant dense<0.000000e+00> : vector<8x128xf32>
    %14 = tpu.matmul %12, %13, %cst_8 {dimension_numbers = #tpu.dot_dimension_numbers<[1], [0], [0], [1], [0, 0, 1, 1], [], []>} : vector<8x128xbf16>, vector<128x128xbf16>, vector<8x128xf32> -> vector<8x128xf32>
    %c0_9 = arith.constant 0 : index
    %c0_10 = arith.constant 0 : index
    %15 = vector.load %arg5[%c0_9, %c0_10] : memref<1x128xf32, #tpu.memory_space<vmem>>, vector<1x128xf32>
    %16 = vector.broadcast %15 : vector<1x128xf32> to vector<8x128xf32>
    %17 = arith.addf %14, %16 : vector<8x128xf32>
    %c0_11 = arith.constant 0 : index
    %c0_12 = arith.constant 0 : index
    %18 = vector.load %arg6[%c0_11, %c0_12] : memref<8x128xf32, #tpu.memory_space<vmem>>, vector<8x128xf32>
    tpu.vector_store %arg6[%c0_11, %c0_12], %17 {strides = array<i32>} : memref<8x128xf32, #tpu.memory_space<vmem>>, vector<8x128xf32>,
    return
  }
  func.func @transform_0(%arg0: i32) -> (i32, i32) {
    %c0_i32 = arith.constant 0 : i32
    %c0_i32_0 = arith.constant 0 : i32
    return %arg0, %c0_i32 : i32, i32
  }
  func.func @transform_1(%arg0: i32) -> (i32, i32) {
    %c0_i32 = arith.constant 0 : i32
    %c0_i32_0 = arith.constant 0 : i32
    %c0_i32_1 = arith.constant 0 : i32
    return %c0_i32, %c0_i32_0 : i32, i32
  }
  func.func @transform_2(%arg0: i32) -> (i32, i32) {
    %c0_i32 = arith.constant 0 : i32
    %c0_i32_0 = arith.constant 0 : i32
    %c0_i32_1 = arith.constant 0 : i32
    return %c0_i32, %c0_i32_0 : i32, i32
  }
  func.func @transform_3(%arg0: i32) -> (i32, i32) {
    %c0_i32 = arith.constant 0 : i32
    %c0_i32_0 = arith.constant 0 : i32
    %c0_i32_1 = arith.constant 0 : i32
    return %c0_i32, %c0_i32_0 : i32, i32
  }
  func.func @transform_4(%arg0: i32) -> (i32, i32) {
    %c0_i32 = arith.constant 0 : i32
    %c0_i32_0 = arith.constant 0 : i32
    %c0_i32_1 = arith.constant 0 : i32
    return %c0_i32, %c0_i32_0 : i32, i32
  }
  func.func @transform_5(%arg0: i32) -> (i32, i32) {
    %c0_i32 = arith.constant 0 : i32
    %c0_i32_0 = arith.constant 0 : i32
    return %arg0, %c0_i32 : i32, i32
  }
}

</mosaic_0001>

<bundles_post_ra>
// kernel: tpu_custom_call.1
= control target key start
LH: loop header
LB: loop body
LE: loop exit
PB: predicated region body
PF: predicated region fallthrough
CT: control target
= control target key end

     0   :  { %10 = vsyncpa [#allocation3], 0  ;;  %s606_s0 = inlined_call_operand.hbm [shape: bf16[8,128], index: 0, kind: input, shape index: {}]   ;;  %s607_s1 = inlined_call_operand.hbm [shape: bf16[128,128], index: 1, kind: input, shape index: {}]   ;;  %s608_s2 = inlined_call_operand.vmem [shape: f32[1,128], index: 2, kind: input, shape index: {}]   ;;  %s609_s3 = inlined_call_operand.hbm [shape: bf16[128,128], index: 3, kind: input, shape index: {}]   ;;  %s610_s4 = inlined_call_operand.vmem [shape: f32[1,128], index: 4, kind: input, shape index: {}]   ;;  %s611_s5 = inlined_call_operand.hbm [shape: f32[8,128], index: 5, kind: output, shape index: {}]  }
   0x1   :  { %11 = vsyncpa [#allocation6], 0 }
   0x2   :  { %12 = vsyncpa [#allocation4], 0  ;;  %s508_s18 = smov [#allocation5]   ;;  %s414_s22 = scalar_lea.hbm %s607_s1, 1024 }
   0x3   :  { %s28_s19 = sshll.u32 %s508_s18, 4  ;;  %p415_p0 = scmp.ne.s32.totalorder %s607_s1, %s414_s22  ;;  %s29_s19 = int_to_ptr.vmem [resolvable:$true] %s28_s19 }
   0x4   :  { %p418_p1 = scmp.lt.u32.totalorder %s414_s22, %s607_s1 }
   0x6   :  { %p420_p2 = pnand %p418_p1, %p415_p0 }
   0x8   :  { %423 = shalt.err (!%p420_p2)
}
   0x9   :  { %s424_s27 = scalar_lea.vmem %s29_s19, 1024  ;;  %p429_p4 = scmp.lt.s32.totalorder %s29_s19, %s29_s19 }
   0xa   :  { %p425_p3 = scmp.ne.s32.totalorder %s29_s19, %s424_s27  ;;  %p430_p5 = scmp.lt.s32.totalorder %s424_s27, %s424_s27 }
   0xc   :  { %p431_p6 = por %p430_p5, %p429_p4 }
   0xe   :  { %p432_p7 = pnand %p431_p6, %p425_p3 }
  0x10   :  { %435 = shalt.err (!%p432_p7)
}
  0x11   :  { %s509_s28 = smov 64   ;;  %s510_s29 = smov 4  }
  0x12   :  { %34 = dma.hbm_to_vmem [thread:$0]  %s607_s1, 1024, %s29_s19, [#allocation6], %s509_s28, %s509_s28, %s510_s29  }
  0x13   :  { %s511_s7 = smov [#allocation2]   ;;  %s512_s9 = smov [#allocation7]  }
  0x14   :  { %s19_s8 = sshll.u32 %s511_s7, 4  ;;  %s42_s10 = sshll.u32 %s512_s9, 4  ;;  %s20_s8 = int_to_ptr.vmem [resolvable:$true] %s19_s8  ;;  %s43_s10 = int_to_ptr.vmem [resolvable:$true] %s42_s10 }
  0x15   :  { %s436_s13 = scalar_lea.hbm %s606_s0, 64 }
  0x16   :  { %p437_p8 = scmp.ne.s32.totalorder %s606_s0, %s436_s13  ;;  %p440_p9 = scmp.lt.u32.totalorder %s436_s13, %s606_s0 }
  0x18   :  { %p442_p10 = pnand %p440_p9, %p437_p8 }
  0x1a   :  { %445 = shalt.err (!%p442_p10)
}
  0x1b   :  { %s446_s1 = scalar_lea.vmem %s20_s8, 64  ;;  %p451_p12 = scmp.lt.s32.totalorder %s20_s8, %s20_s8 }
  0x1c   :  { %p447_p11 = scmp.ne.s32.totalorder %s20_s8, %s446_s1  ;;  %p452_p13 = scmp.lt.s32.totalorder %s446_s1, %s446_s1 }
  0x1e   :  { %p453_p0 = por %p452_p13, %p451_p12 }
  0x20   :  { %p454_p1 = pnand %p453_p0, %p447_p11 }
  0x22   :  { %457 = shalt.err (!%p454_p1)
}
  0x23   :  { %22 = dma.hbm_to_vmem [thread:$0]  %s606_s0, 64, %s20_s8, [#allocation3]  }
  0x24   :  { %s458_s22 = scalar_lea.hbm %s609_s3, 1024 }
  0x25   :  { %p459_p2 = scmp.ne.s32.totalorder %s609_s3, %s458_s22  ;;  %p462_p3 = scmp.lt.u32.totalorder %s458_s22, %s609_s3 }
  0x27   :  { %p464_p4 = pnand %p462_p3, %p459_p2 }
  0x29   :  { %467 = shalt.err (!%p464_p4)
}
  0x2a   :  { %s468_s27 = scalar_lea.vmem %s43_s10, 1024  ;;  %p473_p6 = scmp.lt.s32.totalorder %s43_s10, %s43_s10 }
  0x2b   :  { %p469_p5 = scmp.ne.s32.totalorder %s43_s10, %s468_s27  ;;  %p474_p7 = scmp.lt.s32.totalorder %s468_s27, %s468_s27 }
  0x2d   :  { %p475_p8 = por %p474_p7, %p473_p6 }
  0x2f   :  { %p476_p9 = pnand %p475_p8, %p469_p5 }
  0x31   :  { %479 = shalt.err (!%p476_p9)
}
  0x32   :  { %48 = dma.hbm_to_vmem [thread:$0]  %s609_s3, 1024, %s43_s10, [#allocation6], %s509_s28, %s509_s28, %s510_s29  }
  0x33   :  { %502 = dma.done.wait [#allocation3], 64  }
  0x34   :  { %503 = vsyncadd [#allocation3], 4294967232 }
  0x35   :  { %504 = dma.done.wait [#allocation6], 2048  }
  0x36   :  { %505 = vsyncadd [#allocation6], 4294965248  ;;  %v513_v0 = vmov 0.0   ;;  %vm514_vm0 = vmmov 0   ;;  %v394_v1 = vld [vmem:[#allocation5] sm:$0xff]   ;;  %v395_v2 = vld [vmem:[#allocation5 + $0x8] sm:$0xff]  }
  0x37   :  { %346 = vmatprep.subr.bf16.mxu0 %v513_v0  ;;  %362 = vmatprep.mubr.msk.bf16.mxu0 %vm514_vm0, %v513_v0  ;;  %v396_v3 = vld [vmem:[#allocation5 + $0x10] sm:$0xff]   ;;  %v397_v4 = vld [vmem:[#allocation5 + $0x18] sm:$0xff]   ;;  %v398_v5 = vld [vmem:[#allocation5 + $0x20] sm:$0xff]   ;;  %s515_s7 = smov [#allocation8]  }
  0x38   :  { %366 = vmatprep.subr.bf16.mxu1 %v513_v0  ;;  %382 = vmatprep.mubr.msk.bf16.mxu1 %vm514_vm0, %v513_v0  ;;  %v399_v6 = vld [vmem:[#allocation5 + $0x28] sm:$0xff]   ;;  %v400_v7 = vld [vmem:[#allocation5 + $0x30] sm:$0xff]   ;;  %v401_v8 = vld [vmem:[#allocation5 + $0x38] sm:$0xff]  }
  0x39   :  { %347 = vmatpush3.bf16.msra.mxu0 %v394_v1  ;;  %v61_v9 = vld [vmem:[#allocation2] sm:$0xf]  ;;  %v402_v10 = vld [vmem:[#allocation7] sm:$0xff]   ;;  %v403_v11 = vld [vmem:[#allocation7 + $0x8] sm:$0xff]  }
  0x3a   :  { %348 = vmatprep.subr.bf16.mxu0 %v513_v0  ;;  %367 = vmatpush3.bf16.msra.mxu1 %v402_v10  ;;  %v404_v12 = vld [vmem:[#allocation7 + $0x10] sm:$0xff]   ;;  %v405_v13 = vld [vmem:[#allocation7 + $0x18] sm:$0xff]   ;;  %v406_v14 = vld [vmem:[#allocation7 + $0x20] sm:$0xff]  }
  0x3b   :  { %368 = vmatprep.subr.bf16.mxu1 %v513_v0  ;;  %v407_v15 = vld [vmem:[#allocation7 + $0x28] sm:$0xff]   ;;  %v408_v16 = vld [vmem:[#allocation7 + $0x30] sm:$0xff]   ;;  %v409_v17 = vld [vmem:[#allocation7 + $0x38] sm:$0xff]  }
  0x3c   :  { %v309_v18 = vld [vmem:[%s608_s2] ss:$0 sm:$0xff]  ;;  %s299_s2 = sshll.u32 %s515_s7, 4  ;;  %s300_s2 = int_to_ptr.vmem [resolvable:$true] %s299_s2 }
  0x3d   :  { %349 = vmatpush3.bf16.msra.mxu0 %v395_v2  ;;  %v319_v30 = vld [vmem:[%s610_s4] ss:$0 sm:$0xff]  ;;  %s480_s8 = scalar_lea.vmem %s300_s2, 128  ;;  %p485_p11 = scmp.lt.s32.totalorder %s300_s2, %s300_s2 }
  0x3e   :  { %350 = vmatprep.subr.bf16.mxu0 %v513_v0  ;;  %369 = vmatpush3.bf16.msra.mxu1 %v403_v11  ;;  %p481_p10 = scmp.ne.s32.totalorder %s300_s2, %s480_s8  ;;  %p486_p12 = scmp.lt.s32.totalorder %s480_s8, %s480_s8 }
  0x3f   :  { %370 = vmatprep.subr.bf16.mxu1 %v513_v0 }
  0x40   :  { %p487_p13 = por %p486_p12, %p485_p11 }
  0x41   :  { %351 = vmatpush3.bf16.msra.mxu0 %v396_v3 }
  0x42   :  { %352 = vmatprep.subr.bf16.mxu0 %v513_v0  ;;  %371 = vmatpush3.bf16.msra.mxu1 %v404_v12  ;;  %p488_p0 = pnand %p487_p13, %p481_p10 }
  0x43   :  { %372 = vmatprep.subr.bf16.mxu1 %v513_v0 }
  0x45   :  { %353 = vmatpush3.bf16.msra.mxu0 %v397_v4 }
  0x46   :  { %354 = vmatprep.subr.bf16.mxu0 %v513_v0  ;;  %373 = vmatpush3.bf16.msra.mxu1 %v405_v13 }
  0x47   :  { %374 = vmatprep.subr.bf16.mxu1 %v513_v0 }
  0x49   :  { %355 = vmatpush3.bf16.msra.mxu0 %v398_v5 }
  0x4a   :  { %356 = vmatprep.subr.bf16.mxu0 %v513_v0  ;;  %375 = vmatpush3.bf16.msra.mxu1 %v406_v14 }
  0x4b   :  { %376 = vmatprep.subr.bf16.mxu1 %v513_v0 }
  0x4d   :  { %357 = vmatpush3.bf16.msra.mxu0 %v399_v6 }
  0x4e   :  { %358 = vmatprep.subr.bf16.mxu0 %v513_v0  ;;  %377 = vmatpush3.bf16.msra.mxu1 %v407_v15 }
  0x4f   :  { %378 = vmatprep.subr.bf16.mxu1 %v513_v0 }
  0x51   :  { %359 = vmatpush3.bf16.msra.mxu0 %v400_v7 }
  0x52   :  { %360 = vmatprep.subr.bf16.mxu0 %v513_v0  ;;  %379 = vmatpush3.bf16.msra.mxu1 %v408_v16 }
  0x53   :  { %380 = vmatprep.subr.bf16.mxu1 %v513_v0 }
  0x55   :  { %361 = vmatpush3.bf16.msra.mxu0 %v401_v8 }
  0x56   :  { %381 = vmatpush3.bf16.msra.mxu1 %v409_v17 }
  0x58   :  { %363 = vmatmul.mubr.bf16.vlgmr.msra.gmra.mrb[0].mxu0 %v61_v9 }
 0x12b   :  { %v167_v19 = vpop.f32.mrb[0].mxu0 }
 0x12c   :  { %v168_v20 = vadd.f32 %v309_v18, %v167_v19  ;;  %v364_v21 = vpop.f32.mrb[1].mxu0 }
 0x12d   :  { %v170_v22 = vpop.f32.mrb[2].mxu0 }
 0x12e   :  { %v318_v23 = vmul.f32 -1.442695, %v168_v20  ;;  %v365_v24 = vpop.f32.mrb[3].mxu0 }
 0x130   :  { %410 = vpow2.f32 %v318_v23 }
 0x13a   :  { %v411_v25 = vpop.eup %410 }
 0x13b   :  { %v176_v26 = vadd.f32 1.0, %v411_v25 }
 0x13d   :  { %412 = vrcp.f32 %v176_v26 }
 0x147   :  { %v413_v27 = vpop.eup %412 }
 0x148   :  { %v179_v28 = vmul.f32 %v413_v27, %v168_v20 }
 0x14a   :  { %v180_v29 = vpack.c.bf16 %v179_v28, %v179_v28 }
 0x14c   :  { %383 = vmatmul.mubr.bf16.vlgmr.msra.gmra.mrb[0].mxu1 %v180_v29 }
 0x21f   :  { %v286_v31 = vpop.f32.mrb[0].mxu1 }
 0x220   :  { %v287_v32 = vadd.f32 %v319_v30, %v286_v31  ;;  %v384_v33 = vpop.f32.mrb[1].mxu1 }
 0x221   :  { %v289_v34 = vpop.f32.mrb[2].mxu1 }
 0x222   :  { %292 = vst [vmem:[#allocation8] sm:$0xff] %v287_v32  ;;  %v385_v35 = vpop.f32.mrb[3].mxu1 }
 0x223   :  { %491 = shalt.err (!%p488_p0)
}
 0x224   :  { %s492_s4 = scalar_lea.hbm %s611_s5, 128 }
 0x225   :  { %p493_p1 = scmp.ne.s32.totalorder %s611_s5, %s492_s4  ;;  %p496_p2 = scmp.lt.u32.totalorder %s492_s4, %s611_s5 }
 0x227   :  { %p498_p3 = pnand %p496_p2, %p493_p1 }
 0x229   :  { %501 = shalt.err (!%p498_p3)
}
 0x22a   :  { %302 = dma.vmem_to_hbm [thread:$0]  %s300_s2, 128, %s611_s5, [#allocation4]  }
 0x22b   :  { %506 = dma.done.wait [#allocation4], 128  }
 0x22c   :  { %507 = vsyncadd [#allocation4], 4294967168 }
 0x22d   :  { %306 = vsyncpa [#allocation3], 1 }
 0x22e   :  { %307 = vsyncpa [#allocation6], 1 }
 0x22f   :  { %308 = vsyncpa [#allocation4], 1 }

// kernel: tpu_custom_call.1
= control target key start
LH: loop header
LB: loop body
LE: loop exit
PB: predicated region body
PF: predicated region fallthrough
CT: control target
= control target key end

     0   :  { %10 = vsyncpa [#allocation3], 0  ;;  %s606_s0 = inlined_call_operand.hbm [shape: bf16[8,128], index: 0, kind: input, shape index: {}]   ;;  %s607_s1 = inlined_call_operand.hbm [shape: bf16[128,128], index: 1, kind: input, shape index: {}]   ;;  %s608_s2 = inlined_call_operand.vmem [shape: f32[1,128], index: 2, kind: input, shape index: {}]   ;;  %s609_s3 = inlined_call_operand.hbm [shape: bf16[128,128], index: 3, kind: input, shape index: {}]   ;;  %s610_s4 = inlined_call_operand.vmem [shape: f32[1,128], index: 4, kind: input, shape index: {}]   ;;  %s611_s5 = inlined_call_operand.hbm [shape: f32[8,128], index: 5, kind: output, shape index: {}]  }
   0x1   :  { %11 = vsyncpa [#allocation6], 0 }
   0x2   :  { %12 = vsyncpa [#allocation4], 0  ;;  %s508_s18 = smov [#allocation5]   ;;  %s414_s22 = scalar_lea.hbm %s607_s1, 1024 }
   0x3   :  { %s28_s19 = sshll.u32 %s508_s18, 4  ;;  %p415_p0 = scmp.ne.s32.totalorder %s607_s1, %s414_s22  ;;  %s29_s19 = int_to_ptr.vmem [resolvable:$true] %s28_s19 }
   0x4   :  { %p418_p1 = scmp.lt.u32.totalorder %s414_s22, %s607_s1 }
   0x6   :  { %p420_p2 = pnand %p418_p1, %p415_p0 }
   0x8   :  { %423 = shalt.err (!%p420_p2)
}
   0x9   :  { %s424_s27 = scalar_lea.vmem %s29_s19, 1024  ;;  %p429_p4 = scmp.lt.s32.totalorder %s29_s19, %s29_s19 }
   0xa   :  { %p425_p3 = scmp.ne.s32.totalorder %s29_s19, %s424_s27  ;;  %p430_p5 = scmp.lt.s32.totalorder %s424_s27, %s424_s27 }
   0xc   :  { %p431_p6 = por %p430_p5, %p429_p4 }
   0xe   :  { %p432_p7 = pnand %p431_p6, %p425_p3 }
  0x10   :  { %435 = shalt.err (!%p432_p7)
}
  0x11   :  { %s509_s28 = smov 64   ;;  %s510_s29 = smov 4  }
  0x12   :  { %34 = dma.hbm_to_vmem [thread:$0]  %s607_s1, 1024, %s29_s19, [#allocation6], %s509_s28, %s509_s28, %s510_s29  }
  0x13   :  { %s511_s7 = smov [#allocation2]   ;;  %s512_s9 = smov [#allocation7]  }
  0x14   :  { %s19_s8 = sshll.u32 %s511_s7, 4  ;;  %s42_s10 = sshll.u32 %s512_s9, 4  ;;  %s20_s8 = int_to_ptr.vmem [resolvable:$true] %s19_s8  ;;  %s43_s10 = int_to_ptr.vmem [resolvable:$true] %s42_s10 }
  0x15   :  { %s436_s13 = scalar_lea.hbm %s606_s0, 64 }
  0x16   :  { %p437_p8 = scmp.ne.s32.totalorder %s606_s0, %s436_s13  ;;  %p440_p9 = scmp.lt.u32.totalorder %s436_s13, %s606_s0 }
  0x18   :  { %p442_p10 = pnand %p440_p9, %p437_p8 }
  0x1a   :  { %445 = shalt.err (!%p442_p10)
}
  0x1b   :  { %s446_s1 = scalar_lea.vmem %s20_s8, 64  ;;  %p451_p12 = scmp.lt.s32.totalorder %s20_s8, %s20_s8 }
  0x1c   :  { %p447_p11 = scmp.ne.s32.totalorder %s20_s8, %s446_s1  ;;  %p452_p13 = scmp.lt.s32.totalorder %s446_s1, %s446_s1 }
  0x1e   :  { %p453_p0 = por %p452_p13, %p451_p12 }
  0x20   :  { %p454_p1 = pnand %p453_p0, %p447_p11 }
  0x22   :  { %457 = shalt.err (!%p454_p1)
}
  0x23   :  { %22 = dma.hbm_to_vmem [thread:$0]  %s606_s0, 64, %s20_s8, [#allocation3]  }
  0x24   :  { %s458_s22 = scalar_lea.hbm %s609_s3, 1024 }
  0x25   :  { %p459_p2 = scmp.ne.s32.totalorder %s609_s3, %s458_s22  ;;  %p462_p3 = scmp.lt.u32.totalorder %s458_s22, %s609_s3 }
  0x27   :  { %p464_p4 = pnand %p462_p3, %p459_p2 }
  0x29   :  { %467 = shalt.err (!%p464_p4)
}
  0x2a   :  { %s468_s27 = scalar_lea.vmem %s43_s10, 1024  ;;  %p473_p6 = scmp.lt.s32.totalorder %s43_s10, %s43_s10 }
  0x2b   :  { %p469_p5 = scmp.ne.s32.totalorder %s43_s10, %s468_s27  ;;  %p474_p7 = scmp.lt.s32.totalorder %s468_s27, %s468_s27 }
  0x2d   :  { %p475_p8 = por %p474_p7, %p473_p6 }
  0x2f   :  { %p476_p9 = pnand %p475_p8, %p469_p5 }
  0x31   :  { %479 = shalt.err (!%p476_p9)
}
  0x32   :  { %48 = dma.hbm_to_vmem [thread:$0]  %s609_s3, 1024, %s43_s10, [#allocation6], %s509_s28, %s509_s28, %s510_s29  }
  0x33   :  { %502 = dma.done.wait [#allocation3], 64  }
  0x34   :  { %503 = vsyncadd [#allocation3], 4294967232 }
  0x35   :  { %504 = dma.done.wait [#allocation6], 2048  }
  0x36   :  { %505 = vsyncadd [#allocation6], 4294965248  ;;  %v513_v0 = vmov 0.0   ;;  %vm514_vm0 = vmmov 0   ;;  %v394_v1 = vld [vmem:[#allocation5] sm:$0xff]   ;;  %v395_v2 = vld [vmem:[#allocation5 + $0x8] sm:$0xff]  }
  0x37   :  { %346 = vmatprep.subr.bf16.mxu0 %v513_v0  ;;  %362 = vmatprep.mubr.msk.bf16.mxu0 %vm514_vm0, %v513_v0  ;;  %v396_v3 = vld [vmem:[#allocation5 + $0x10] sm:$0xff]   ;;  %v397_v4 = vld [vmem:[#allocation5 + $0x18] sm:$0xff]   ;;  %v398_v5 = vld [vmem:[#allocation5 + $0x20] sm:$0xff]   ;;  %s515_s7 = smov [#allocation8]  }
  0x38   :  { %366 = vmatprep.subr.bf16.mxu1 %v513_v0  ;;  %382 = vmatprep.mubr.msk.bf16.mxu1 %vm514_vm0, %v513_v0  ;;  %v399_v6 = vld [vmem:[#allocation5 + $0x28] sm:$0xff]   ;;  %v400_v7 = vld [vmem:[#allocation5 + $0x30] sm:$0xff]   ;;  %v401_v8 = vld [vmem:[#allocation5 + $0x38] sm:$0xff]  }
  0x39   :  { %347 = vmatpush3.bf16.msra.mxu0 %v394_v1  ;;  %v61_v9 = vld [vmem:[#allocation2] sm:$0xf]  ;;  %v402_v10 = vld [vmem:[#allocation7] sm:$0xff]   ;;  %v403_v11 = vld [vmem:[#allocation7 + $0x8] sm:$0xff]  }
  0x3a   :  { %348 = vmatprep.subr.bf16.mxu0 %v513_v0  ;;  %367 = vmatpush3.bf16.msra.mxu1 %v402_v10  ;;  %v404_v12 = vld [vmem:[#allocation7 + $0x10] sm:$0xff]   ;;  %v405_v13 = vld [vmem:[#allocation7 + $0x18] sm:$0xff]   ;;  %v406_v14 = vld [vmem:[#allocation7 + $0x20] sm:$0xff]  }
  0x3b   :  { %368 = vmatprep.subr.bf16.mxu1 %v513_v0  ;;  %v407_v15 = vld [vmem:[#allocation7 + $0x28] sm:$0xff]   ;;  %v408_v16 = vld [vmem:[#allocation7 + $0x30] sm:$0xff]   ;;  %v409_v17 = vld [vmem:[#allocation7 + $0x38] sm:$0xff]  }
  0x3c   :  { %v309_v18 = vld [vmem:[%s608_s2] ss:$0 sm:$0xff]  ;;  %s299_s2 = sshll.u32 %s515_s7, 4  ;;  %s300_s2 = int_to_ptr.vmem [resolvable:$true] %s299_s2 }
  0x3d   :  { %349 = vmatpush3.bf16.msra.mxu0 %v395_v2  ;;  %v319_v30 = vld [vmem:[%s610_s4] ss:$0 sm:$0xff]  ;;  %s480_s8 = scalar_lea.vmem %s300_s2, 128  ;;  %p485_p11 = scmp.lt.s32.totalorder %s300_s2, %s300_s2 }
  0x3e   :  { %350 = vmatprep.subr.bf16.mxu0 %v513_v0  ;;  %369 = vmatpush3.bf16.msra.mxu1 %v403_v11  ;;  %p481_p10 = scmp.ne.s32.totalorder %s300_s2, %s480_s8  ;;  %p486_p12 = scmp.lt.s32.totalorder %s480_s8, %s480_s8 }
  0x3f   :  { %370 = vmatprep.subr.bf16.mxu1 %v513_v0 }
  0x40   :  { %p487_p13 = por %p486_p12, %p485_p11 }
  0x41   :  { %351 = vmatpush3.bf16.msra.mxu0 %v396_v3 }
  0x42   :  { %352 = vmatprep.subr.bf16.mxu0 %v513_v0  ;;  %371 = vmatpush3.bf16.msra.mxu1 %v404_v12  ;;  %p488_p0 = pnand %p487_p13, %p481_p10 }
  0x43   :  { %372 = vmatprep.subr.bf16.mxu1 %v513_v0 }
  0x45   :  { %353 = vmatpush3.bf16.msra.mxu0 %v397_v4 }
  0x46   :  { %354 = vmatprep.subr.bf16.mxu0 %v513_v0  ;;  %373 = vmatpush3.bf16.msra.mxu1 %v405_v13 }
  0x47   :  { %374 = vmatprep.subr.bf16.mxu1 %v513_v0 }
  0x49   :  { %355 = vmatpush3.bf16.msra.mxu0 %v398_v5 }
  0x4a   :  { %356 = vmatprep.subr.bf16.mxu0 %v513_v0  ;;  %375 = vmatpush3.bf16.msra.mxu1 %v406_v14 }
  0x4b   :  { %376 = vmatprep.subr.bf16.mxu1 %v513_v0 }
  0x4d   :  { %357 = vmatpush3.bf16.msra.mxu0 %v399_v6 }
  0x4e   :  { %358 = vmatprep.subr.bf16.mxu0 %v513_v0  ;;  %377 = vmatpush3.bf16.msra.mxu1 %v407_v15 }
  0x4f   :  { %378 = vmatprep.subr.bf16.mxu1 %v513_v0 }
  0x51   :  { %359 = vmatpush3.bf16.msra.mxu0 %v400_v7 }
  0x52   :  { %360 = vmatprep.subr.bf16.mxu0 %v513_v0  ;;  %379 = vmatpush3.bf16.msra.mxu1 %v408_v16 }
  0x53   :  { %380 = vmatprep.subr.bf16.mxu1 %v513_v0 }
  0x55   :  { %361 = vmatpush3.bf16.msra.mxu0 %v401_v8 }
  0x56   :  { %381 = vmatpush3.bf16.msra.mxu1 %v409_v17 }
  0x58   :  { %363 = vmatmul.mubr.bf16.vlgmr.msra.gmra.mrb[0].mxu0 %v61_v9 }
 0x12b   :  { %v167_v19 = vpop.f32.mrb[0].mxu0 }
 0x12c   :  { %v168_v20 = vadd.f32 %v309_v18, %v167_v19  ;;  %v364_v21 = vpop.f32.mrb[1].mxu0 }
 0x12d   :  { %v170_v22 = vpop.f32.mrb[2].mxu0 }
 0x12e   :  { %v318_v23 = vmul.f32 -1.442695, %v168_v20  ;;  %v365_v24 = vpop.f32.mrb[3].mxu0 }
 0x130   :  { %410 = vpow2.f32 %v318_v23 }
 0x13a   :  { %v411_v25 = vpop.eup %410 }
 0x13b   :  { %v176_v26 = vadd.f32 1.0, %v411_v25 }
 0x13d   :  { %412 = vrcp.f32 %v176_v26 }
 0x147   :  { %v413_v27 = vpop.eup %412 }
 0x148   :  { %v179_v28 = vmul.f32 %v413_v27, %v168_v20 }
 0x14a   :  { %v180_v29 = vpack.c.bf16 %v179_v28, %v179_v28 }
 0x14c   :  { %383 = vmatmul.mubr.bf16.vlgmr.msra.gmra.mrb[0].mxu1 %v180_v29 }
 0x21f   :  { %v286_v31 = vpop.f32.mrb[0].mxu1 }
 0x220   :  { %v287_v32 = vadd.f32 %v319_v30, %v286_v31  ;;  %v384_v33 = vpop.f32.mrb[1].mxu1 }
 0x221   :  { %v289_v34 = vpop.f32.mrb[2].mxu1 }
 0x222   :  { %292 = vst [vmem:[#allocation8] sm:$0xff] %v287_v32  ;;  %v385_v35 = vpop.f32.mrb[3].mxu1 }
 0x223   :  { %491 = shalt.err (!%p488_p0)
}
 0x224   :  { %s492_s4 = scalar_lea.hbm %s611_s5, 128 }
 0x225   :  { %p493_p1 = scmp.ne.s32.totalorder %s611_s5, %s492_s4  ;;  %p496_p2 = scmp.lt.u32.totalorder %s492_s4, %s611_s5 }
 0x227   :  { %p498_p3 = pnand %p496_p2, %p493_p1 }
 0x229   :  { %501 = shalt.err (!%p498_p3)
}
 0x22a   :  { %302 = dma.vmem_to_hbm [thread:$0]  %s300_s2, 128, %s611_s5, [#allocation4]  }
 0x22b   :  { %506 = dma.done.wait [#allocation4], 128  }
 0x22c   :  { %507 = vsyncadd [#allocation4], 4294967168 }
 0x22d   :  { %306 = vsyncpa [#allocation3], 1 }
 0x22e   :  { %307 = vsyncpa [#allocation6], 1 }
 0x22f   :  { %308 = vsyncpa [#allocation4], 1 }

</bundles_post_ra>
